<compile_context>
chip_gen: v7x
topology: tpu7x:2x2x1
jax: 0.10.0
libtpu: 0.0.40
codegen_flags: <defaults>
</compile_context>

<pallas_src>
import jax
import jax.numpy as jnp
from jax.experimental import pallas as pl
from jax.experimental.pallas import tpu as pltpu


def domain_classifier_kernel(x_ref, w1_ref, b1_ref, w2t_ref, b2_ref, o_ref):
    # First linear on the MXU: (TB, 256) @ (256, 128); inputs may be bf16,
    # accumulation is f32.
    h = jnp.dot(x_ref[...], w1_ref[...], preferred_element_type=jnp.float32)
    h = h + b1_ref[...]
    # LeakyReLU(0.2) on the VPU: max(h, 0.2*h) == where(h>=0, h, 0.2*h).
    h = jnp.maximum(h, 0.2 * h)
    # TODO(synk): Dropout(p=0.2) is identity in eval/inference mode; training-mode
    # stochastic dropout (pltpu.prng_seed + prng_random_bits, 1/(1-p) scaling)
    # is not implemented here.
    # Second "linear" (128 -> 1): an N=1 matmul would waste the MXU, so do a
    # VPU multiply + XLU cross-lane reduction. w2t is (1, 128) f32; b2 is a
    # scalar read from SMEM.
    y = jnp.sum(h * w2t_ref[...], axis=-1, keepdims=True) + b2_ref[0]
    # Sigmoid: exp and the approximate reciprocal both issue on the EUP slot.
    o_ref[...] = pl.reciprocal(1.0 + jnp.exp(-y), approx=True).astype(o_ref.dtype)


def _batch_dim_semantics():
    """CORE_PARALLEL only changes codegen on multi-TensorCore chips (v7x).

    Per the perf review, "parallel" vs "arbitrary" is a measured no-op; only
    CORE_PARALLEL shards a grid axis across the 2 TCs of a v7x chip. Keep the
    verified "parallel" path on single-TC v5e/v6e.
    """
    try:
        kind = jax.devices()[0].device_kind.lower()
    except Exception:
        kind = ""
    if "v7" in kind:
        return (pltpu.CORE_PARALLEL,)
    return ("parallel",)


def domain_classifier(x, w1, b1, w2, b2, *, tb=2048,
                      compute_dtype=jnp.bfloat16, x_buffers=None):
    """x: (B, 256); w1: (256, 128); b1: (1, 128); w2: (128, 1); b2: (1, 1) or (1,).

    tb:            batch tile (rows per grid step). Small batches collapse to a
                    single step (TB = B).
    compute_dtype:  dtype for x / w1 fed to the MXU (bf16 halves HBM traffic;
                    pass None or jnp.float32 for exact f32 parity).
    x_buffers:      optional pipeline depth for the x stream (e.g. 3 on v5e if
                    the trace shows exposed DMA); None = default double-buffer.
    """
    B, d_in = x.shape
    d_hid = w1.shape[1]

    # Batch tile: a single step for small/inference batches, otherwise 2048-row
    # tiles. A bf16 (2048, 256) x tile is 1 MiB; double-buffered plus the
    # 64 KiB of weights this is far under every chip's VMEM budget (v7x 64 MiB).
    TB = tb if B >= tb else B
    grid = (pl.cdiv(B, TB),)

    # Cast the two big HBM streams; keep the bias/second-layer params in f32.
    if compute_dtype is not None:
        x = x.astype(compute_dtype)
        w1 = w1.astype(compute_dtype)
    b1 = b1.astype(jnp.float32)
    # Second-layer weight as a (1, 128) f32 row for the VPU/XLU reduction.
    w2t = w2.reshape(1, d_hid).astype(jnp.float32)
    # b2 as a 1-D (1,) SMEM scalar (a 2-D [1,1] SMEM ref pads to ~4 KiB).
    b2 = b2.reshape(1).astype(jnp.float32)

    x_item = jnp.dtype(x.dtype).itemsize
    w1_item = jnp.dtype(w1.dtype).itemsize
    flops = 2 * B * d_in * d_hid + 2 * B * d_hid
    bytes_accessed = (B * d_in * x_item) + (d_in * d_hid * w1_item) \
                     + (d_hid * 4) + (d_hid * 4) + 4 + (B * 4)

    x_spec_kwargs = {}
    if x_buffers is not None and x_buffers != 2:
        x_spec_kwargs["pipeline_mode"] = pl.Buffered(x_buffers)

    return pl.pallas_call(
        domain_classifier_kernel,
        out_shape=jax.ShapeDtypeStruct((B, 1), jnp.float32),
        grid=grid,
        in_specs=[
            # x: tiled over batch, pipelined (the dominant HBM stream).
            pl.BlockSpec((TB, d_in), lambda i: (i, 0), **x_spec_kwargs),
            # Weights/biases: constant block index -> stay VMEM-resident.
            pl.BlockSpec((d_in, d_hid), lambda i: (0, 0)),
            pl.BlockSpec((1, d_hid), lambda i: (0, 0)),
            pl.BlockSpec((1, d_hid), lambda i: (0, 0)),
            # b2 scalar lives in SMEM.
            pl.BlockSpec(memory_space=pltpu.MemorySpace.SMEM),
        ],
        # (TB, 1) output kept lane-sparse on purpose: output bytes are <0.5% of
        # traffic (see review), so the masked-store cleanup is skipped.
        out_specs=pl.BlockSpec((TB, 1), lambda i: (i, 0)),
        compiler_params=pltpu.CompilerParams(
            dimension_semantics=_batch_dim_semantics(),
            vmem_limit_bytes=32 * 1024 * 1024,
        ),
        cost_estimate=pl.CostEstimate(
            flops=flops,
            transcendentals=2 * B,           # exp + approx reciprocal per row
            bytes_accessed=bytes_accessed,
        ),
    )(x, w1, b1, w2t, b2)


def init_params(key):
    """Deterministic init mimicking PyTorch nn.Linear default (uniform +/- 1/sqrt(fan_in))."""
    k1, k2, k3, k4 = jax.random.split(key, 4)
    bound1 = 1.0 / jnp.sqrt(256.0)
    bound2 = 1.0 / jnp.sqrt(128.0)
    w1 = jax.random.uniform(k1, (256, 128), jnp.float32, -bound1, bound1)
    b1 = jax.random.uniform(k2, (1, 128), jnp.float32, -bound1, bound1)
    w2 = jax.random.uniform(k3, (128, 1), jnp.float32, -bound2, bound2)
    b2 = jax.random.uniform(k4, (1, 1), jnp.float32, -bound2, bound2)
    return w1, b1, w2, b2


def reference(x, w1, b1, w2, b2):
    h = x @ w1 + b1
    h = jnp.where(h >= 0, h, 0.2 * h)
    y = h @ w2 + b2.reshape(1, 1)
    return jax.nn.sigmoid(y)


if __name__ == "__main__":
    key = jax.random.PRNGKey(0)
    kx1, kx2, kp = jax.random.split(key, 3)
    w1, b1, w2, b2 = init_params(kp)

    # Tolerance covers bf16 inputs (f32 accumulate) + the EUP approximate
    # reciprocal in the sigmoid.
    ATOL = RTOL = 1e-2

    # 1) Small-batch / inference path: TB == B, single grid step.
    B_small = 16
    x_small = jax.random.normal(kx1, (B_small, 256), jnp.float32)
    out_small = jax.block_until_ready(domain_classifier(x_small, w1, b1, w2, b2))
    ref_small = reference(x_small, w1, b1, w2, b2)
    assert out_small.shape == (B_small, 1)
    assert jnp.allclose(out_small, ref_small, atol=ATOL, rtol=RTOL), \
        "small-batch mismatch vs reference"

    # 2) Tiled path: 2 grid steps exercise the pipelined x DMA and the
    #    VMEM-resident weights (production batches use the default tb=2048).
    B_big = 256
    x_big = jax.random.normal(kx2, (B_big, 256), jnp.float32)
    out_big = jax.block_until_ready(
        domain_classifier(x_big, w1, b1, w2, b2, tb=128))
    ref_big = reference(x_big, w1, b1, w2, b2)
    assert out_big.shape == (B_big, 1)
    assert jnp.allclose(out_big, ref_big, atol=ATOL, rtol=RTOL), \
        "tiled-batch mismatch vs reference"

    print("KERNEL_OK")
</pallas_src>

<mosaic_0001>
module attributes {stable_mosaic.version = 11 : i64} {
  func.func @domain_classifier_kernel(%arg0: i32, %arg1: memref<16x256xbf16, #tpu.memory_space<vmem>>, %arg2: memref<256x128xbf16, #tpu.memory_space<vmem>>, %arg3: memref<1x128xf32, #tpu.memory_space<vmem>>, %arg4: memref<1x128xf32, #tpu.memory_space<vmem>>, %arg5: memref<1xf32, #tpu.memory_space<smem>>, %arg6: memref<16x1xf32, #tpu.memory_space<vmem>>) attributes {dimension_semantics = [#tpu.dimension_semantics<parallel>], iteration_bounds = array<i64: 1>, scalar_prefetch = 0 : i64, scratch_operands = 0 : i64, tpu.core_type = #tpu.core_type<tc>, window_params = [{transform_indices = @transform_0, window_bounds = array<i64: 16, 256>}, {pipeline_mode = #tpu.pipeline_mode<synchronous>, transform_indices = @transform_1, window_bounds = array<i64: 256, 128>}, {pipeline_mode = #tpu.pipeline_mode<synchronous>, transform_indices = @transform_2, window_bounds = array<i64: 1, 128>}, {pipeline_mode = #tpu.pipeline_mode<synchronous>, transform_indices = @transform_3, window_bounds = array<i64: 1, 128>}, {transform_indices = @transform_4, window_bounds = array<i64: 1>}, {transform_indices = @transform_5, window_bounds = array<i64: 16, 1>}]} {
    %c0 = arith.constant 0 : index
    %c0_0 = arith.constant 0 : index
    %0 = vector.load %arg1[%c0, %c0_0] : memref<16x256xbf16, #tpu.memory_space<vmem>>, vector<16x256xbf16>
    %c0_1 = arith.constant 0 : index
    %c0_2 = arith.constant 0 : index
    %1 = vector.load %arg2[%c0_1, %c0_2] : memref<256x128xbf16, #tpu.memory_space<vmem>>, vector<256x128xbf16>
    %cst = arith.constant dense<0.000000e+00> : vector<16x128xf32>
    %2 = tpu.matmul %0, %1, %cst {dimension_numbers = #tpu.dot_dimension_numbers<[1], [0], [0], [1], [0, 0, 1, 1], [], []>} : vector<16x256xbf16>, vector<256x128xbf16>, vector<16x128xf32> -> vector<16x128xf32>
    %c0_3 = arith.constant 0 : index
    %c0_4 = arith.constant 0 : index
    %3 = vector.load %arg3[%c0_3, %c0_4] : memref<1x128xf32, #tpu.memory_space<vmem>>, vector<1x128xf32>
    %4 = vector.broadcast %3 : vector<1x128xf32> to vector<16x128xf32>
    %5 = arith.addf %2, %4 : vector<16x128xf32>
    %cst_5 = arith.constant 2.000000e-01 : f32
    %6 = vector.broadcast %cst_5 : f32 to vector<16x128xf32>
    %7 = arith.mulf %6, %5 : vector<16x128xf32>
    %8 = arith.maximumf %5, %7 : vector<16x128xf32>
    %c0_6 = arith.constant 0 : index
    %c0_7 = arith.constant 0 : index
    %9 = vector.load %arg4[%c0_6, %c0_7] : memref<1x128xf32, #tpu.memory_space<vmem>>, vector<1x128xf32>
    %10 = vector.broadcast %9 : vector<1x128xf32> to vector<16x128xf32>
    %11 = arith.mulf %8, %10 : vector<16x128xf32>
    %cst_8 = arith.constant dense<0.000000e+00> : vector<16xf32>
    %12 = vector.multi_reduction <add>, %11, %cst_8 [1] : vector<16x128xf32> to vector<16xf32>
    %13 = vector.shape_cast %12 : vector<16xf32> to vector<16x1xf32>
    %c0_9 = arith.constant 0 : index
    %14 = memref.load %arg5[%c0_9] : memref<1xf32, #tpu.memory_space<smem>>
    %15 = vector.broadcast %14 : f32 to vector<16x1xf32>
    %16 = arith.addf %13, %15 : vector<16x1xf32>
    %cst_10 = arith.constant 0.000000e+00 : f32
    %17 = vector.broadcast %cst_10 : f32 to vector<16x1xf32>
    %18 = arith.subf %17, %16 : vector<16x1xf32>
    %19 = math.exp %18 : vector<16x1xf32>
    %cst_11 = arith.constant 1.000000e+00 : f32
    %20 = vector.broadcast %cst_11 : f32 to vector<16x1xf32>
    %21 = arith.addf %20, %19 : vector<16x1xf32>
    %22 = tpu.reciprocal %21 {approx = true} : vector<16x1xf32> -> vector<16x1xf32>
    %c0_12 = arith.constant 0 : index
    %c0_13 = arith.constant 0 : index
    %23 = vector.load %arg6[%c0_12, %c0_13] : memref<16x1xf32, #tpu.memory_space<vmem>>, vector<16x1xf32>
    tpu.vector_store %arg6[%c0_12, %c0_13], %22 {strides = array<i32>} : memref<16x1xf32, #tpu.memory_space<vmem>>, vector<16x1xf32>,
    return
  }
  func.func @transform_0(%arg0: i32) -> (i32, i32) {
    %c0_i32 = arith.constant 0 : i32
    %c0_i32_0 = arith.constant 0 : i32
    return %arg0, %c0_i32 : i32, i32
  }
  func.func @transform_1(%arg0: i32) -> (i32, i32) {
    %c0_i32 = arith.constant 0 : i32
    %c0_i32_0 = arith.constant 0 : i32
    %c0_i32_1 = arith.constant 0 : i32
    return %c0_i32, %c0_i32_0 : i32, i32
  }
  func.func @transform_2(%arg0: i32) -> (i32, i32) {
    %c0_i32 = arith.constant 0 : i32
    %c0_i32_0 = arith.constant 0 : i32
    %c0_i32_1 = arith.constant 0 : i32
    return %c0_i32, %c0_i32_0 : i32, i32
  }
  func.func @transform_3(%arg0: i32) -> (i32, i32) {
    %c0_i32 = arith.constant 0 : i32
    %c0_i32_0 = arith.constant 0 : i32
    %c0_i32_1 = arith.constant 0 : i32
    return %c0_i32, %c0_i32_0 : i32, i32
  }
  func.func @transform_4(%arg0: i32) -> i32 {
    %c0_i32 = arith.constant 0 : i32
    %c0_i32_0 = arith.constant 0 : i32
    return %c0_i32 : i32
  }
  func.func @transform_5(%arg0: i32) -> (i32, i32) {
    %c0_i32 = arith.constant 0 : i32
    %c0_i32_0 = arith.constant 0 : i32
    return %arg0, %c0_i32 : i32, i32
  }
}

</mosaic_0001>

<bundles_post_ra>
// kernel: tpu_custom_call.1
= control target key start
LH: loop header
LB: loop body
LE: loop exit
PB: predicated region body
PF: predicated region fallthrough
CT: control target
= control target key end

     0   :  { %11 = vsyncpa [#allocation4], 0  ;;  %s476_s0 = inlined_call_operand.hbm [shape: bf16[16,256], index: 0, kind: input, shape index: {}]   ;;  %s477_s1 = inlined_call_operand.hbm [shape: bf16[256,128], index: 1, kind: input, shape index: {}]   ;;  %s478_s2 = inlined_call_operand.vmem [shape: f32[1,128], index: 2, kind: input, shape index: {}]   ;;  %s479_s3 = inlined_call_operand.vmem [shape: f32[1,128], index: 3, kind: input, shape index: {}]   ;;  %s480_s4 = inlined_call_operand.<no memory space> [shape: f32[1], index: 4, kind: input, shape index: {}]   ;;  %s481_s5 = inlined_call_operand.vmem [shape: f32[16,1], index: 5, kind: output, shape index: {}]  }
   0x1   :  { %12 = vsyncpa [#allocation6], 0  ;;  %s401_s18 = smov [#allocation3]   ;;  %s353_s22 = scalar_lea.hbm %s476_s0, 256 }
   0x2   :  { %s18_s19 = sshll.u32 %s401_s18, 4  ;;  %p354_p0 = scmp.ne.s32.totalorder %s476_s0, %s353_s22  ;;  %s19_s19 = int_to_ptr.vmem [resolvable:$true] %s18_s19 }
   0x3   :  { %p357_p1 = scmp.lt.u32.totalorder %s353_s22, %s476_s0 }
   0x5   :  { %p359_p2 = pnand %p357_p1, %p354_p0 }
   0x7   :  { %362 = shalt.err (!%p359_p2)
}
   0x8   :  { %s363_s27 = scalar_lea.vmem %s19_s19, 256  ;;  %p368_p4 = scmp.lt.s32.totalorder %s19_s19, %s19_s19 }
   0x9   :  { %p364_p3 = scmp.ne.s32.totalorder %s19_s19, %s363_s27  ;;  %p369_p5 = scmp.lt.s32.totalorder %s363_s27, %s363_s27 }
   0xb   :  { %p370_p6 = por %p369_p5, %p368_p4 }
   0xd   :  { %p371_p7 = pnand %p370_p6, %p364_p3 }
   0xf   :  { %374 = shalt.err (!%p371_p7)
}
  0x10   :  { %s402_s28 = smov 128   ;;  %s403_s29 = smov 8  }
  0x11   :  { %24 = dma.hbm_to_vmem [thread:$0]  %s476_s0, 256, %s19_s19, [#allocation4], %s402_s28, %s402_s28, %s403_s29  }
  0x12   :  { %s404_s7 = smov [#allocation5]   ;;  %s375_s11 = scalar_lea.hbm %s477_s1, 2048 }
  0x13   :  { %s30_s8 = sshll.u32 %s404_s7, 4  ;;  %p376_p8 = scmp.ne.s32.totalorder %s477_s1, %s375_s11  ;;  %s31_s8 = int_to_ptr.vmem [resolvable:$true] %s30_s8 }
  0x14   :  { %p379_p9 = scmp.lt.u32.totalorder %s375_s11, %s477_s1 }
  0x16   :  { %p381_p10 = pnand %p379_p9, %p376_p8 }
  0x18   :  { %384 = shalt.err (!%p381_p10)
}
  0x19   :  { %s385_s16 = scalar_lea.vmem %s31_s8, 2048  ;;  %p390_p12 = scmp.lt.s32.totalorder %s31_s8, %s31_s8 }
  0x1a   :  { %p386_p11 = scmp.ne.s32.totalorder %s31_s8, %s385_s16  ;;  %p391_p13 = scmp.lt.s32.totalorder %s385_s16, %s385_s16 }
  0x1c   :  { %p392_p0 = por %p391_p13, %p390_p12 }
  0x1e   :  { %p393_p1 = pnand %p392_p0, %p386_p11 }
  0x20   :  { %396 = shalt.err (!%p393_p1)
}
  0x21   :  { %s405_s0 = smov 64   ;;  %s406_s17 = smov 4  }
  0x22   :  { %36 = dma.hbm_to_vmem [thread:$0]  %s477_s1, 2048, %s31_s8, [#allocation6], %s405_s0, %s405_s0, %s406_s17  }
  0x23   :  { %397 = dma.done.wait [#allocation4], 256  }
  0x24   :  { %398 = vsyncadd [#allocation4], 4294967040 }
  0x25   :  { %399 = dma.done.wait [#allocation6], 2048  }
  0x26   :  { %400 = vsyncadd [#allocation6], 4294965248  ;;  %v326_v0 = vld [vmem:[#allocation5 + $0x40] sm:$0xff]   ;;  %v328_v2 = vld [vmem:[#allocation5 + $0x48] sm:$0xff]   ;;  %v256_v34 = vstv %s480_s4  ;;  %vm269_vm0 = vcmask 7168  }
  0x27   :  { %v327_v1 = vld [vmem:[#allocation5] sm:$0xff]   ;;  %298 = vmatprep.subr.bf16.mxu0 %v326_v0  ;;  %v329_v3 = vld [vmem:[#allocation5 + $0x8] sm:$0xff]   ;;  %v330_v4 = vld [vmem:[#allocation5 + $0x50] sm:$0xff]  }
  0x28   :  { %299 = vmatpush3.bf16.msra.mxu0 %v327_v1  ;;  %v331_v5 = vld [vmem:[#allocation5 + $0x10] sm:$0xff]   ;;  %v332_v6 = vld [vmem:[#allocation5 + $0x58] sm:$0xff]   ;;  %v334_v8 = vld [vmem:[#allocation5 + $0x60] sm:$0xff]  }
  0x29   :  { %300 = vmatprep.subr.bf16.mxu0 %v328_v2  ;;  %v333_v7 = vld [vmem:[#allocation5 + $0x18] sm:$0xff]   ;;  %v335_v9 = vld [vmem:[#allocation5 + $0x20] sm:$0xff]   ;;  %v336_v10 = vld [vmem:[#allocation5 + $0x68] sm:$0xff]  }
  0x2a   :  { %v344_v11 = vld [vmem:[#allocation3 + $0x4] ss:$8 sps:$4 sm:$0xff]   ;;  %v337_v12 = vld [vmem:[#allocation5 + $0x28] sm:$0xff]   ;;  %v342_v17 = vld [vmem:[#allocation3] ss:$8 sps:$4 sm:$0xff]  }
  0x2b   :  { %229 = vmatprep.mubr.bf16.mxu0 %v344_v11  ;;  %v338_v13 = vld [vmem:[#allocation5 + $0x70] sm:$0xff]   ;;  %v340_v15 = vld [vmem:[#allocation5 + $0x78] sm:$0xff]  }
  0x2c   :  { %301 = vmatpush3.bf16.msra.mxu0 %v329_v3  ;;  %v339_v14 = vld [vmem:[#allocation5 + $0x30] sm:$0xff]   ;;  %v341_v16 = vld [vmem:[#allocation5 + $0x38] sm:$0xff]  }
  0x2d   :  { %302 = vmatprep.subr.bf16.mxu0 %v330_v4  ;;  %v278_v19 = vld [vmem:[%s478_s2] ss:$0 sm:$0xff] }
  0x2e   :  { %v297_v28 = vld [vmem:[%s479_s3] ss:$0 sm:$0xff] }
  0x30   :  { %303 = vmatpush3.bf16.msra.mxu0 %v331_v5 }
  0x31   :  { %304 = vmatprep.subr.bf16.mxu0 %v332_v6 }
  0x34   :  { %305 = vmatpush3.bf16.msra.mxu0 %v333_v7 }
  0x35   :  { %306 = vmatprep.subr.bf16.mxu0 %v334_v8 }
  0x38   :  { %307 = vmatpush3.bf16.msra.mxu0 %v335_v9 }
  0x39   :  { %308 = vmatprep.subr.bf16.mxu0 %v336_v10 }
  0x3c   :  { %309 = vmatpush3.bf16.msra.mxu0 %v337_v12 }
  0x3d   :  { %310 = vmatprep.subr.bf16.mxu0 %v338_v13 }
  0x40   :  { %311 = vmatpush3.bf16.msra.mxu0 %v339_v14 }
  0x41   :  { %312 = vmatprep.subr.bf16.mxu0 %v340_v15 }
  0x44   :  { %313 = vmatpush3.bf16.msra.mxu0 %v341_v16 }
  0x47   :  { %230 = vmatmul.mubr.bf16.vlgmr.msra.gmra.mrb[0].mxu0 %v342_v17 }
 0x11a   :  { %v314_v18 = vpop.f32.mrb[0].mxu0 }
 0x11b   :  { %v315_v20 = vpop.f32.mrb[1].mxu0 }
 0x11c   :  { %v316_v21 = vadd.f32 %v315_v20, %v314_v18  ;;  %v317_v22 = vpop.f32.mrb[2].mxu0 }
 0x11d   :  { %v318_v23 = vpop.f32.mrb[3].mxu0 }
 0x11e   :  { %v232_v24 = vadd.f32 %v316_v21, %v278_v19  ;;  %v319_v25 = vadd.f32 %v318_v23, %v317_v22 }
 0x120   :  { %v235_v26 = vadd.f32 %v319_v25, %v278_v19  ;;  %v238_v27 = vmul.f32 0.2, %v232_v24 }
 0x122   :  { %v239_v29 = vmul.f32 0.2, %v235_v26  ;;  %v240_v30 = vmax.f32 %v232_v24, %v238_v27 }
 0x124   :  { %v249_v31 = vmul.f32 %v297_v28, %v240_v30  ;;  %v241_v32 = vmax.f32 %v235_v26, %v239_v29 }
 0x126   :  { %251 = vadd.xlane.f32.xlu0 %v249_v31  ;;  %v250_v33 = vmul.f32 %v297_v28, %v241_v32 }
 0x12a   :  { %253 = vadd.xlane.f32.xlu0 %v250_v33 }
 0x1b3   :  { %v252_v35 = vpop.xlane.xlu0 %251 }
 0x1b4   :  { %v257_v36 = vadd.f32 %v256_v34, %v252_v35 }
 0x1b6   :  { %v259_v37 = vsub.f32 0.0, %v257_v36 }
 0x1b7   :  { %v254_v38 = vpop.xlane.xlu0 %253 }
 0x1b8   :  { %v261_v39 = vmul.f32 1.442695, %v259_v37  ;;  %v258_v40 = vadd.f32 %v256_v34, %v254_v38 }
 0x1ba   :  { %345 = vpow2.f32 %v261_v39  ;;  %v260_v41 = vsub.f32 0.0, %v258_v40 }
 0x1bc   :  { %v263_v42 = vmul.f32 1.442695, %v260_v41 }
 0x1be   :  { %347 = vpow2.f32 %v263_v42 }
 0x1c4   :  { %v346_v43 = vpop.eup %345 }
 0x1c5   :  { %v265_v44 = vadd.f32 1.0, %v346_v43 }
 0x1c7   :  { %349 = vrcp.f32 %v265_v44 }
 0x1c8   :  { %v348_v45 = vpop.eup %347 }
 0x1c9   :  { %v266_v46 = vadd.f32 1.0, %v348_v45 }
 0x1cb   :  { %351 = vrcp.f32 %v266_v46 }
 0x1d1   :  { %v350_v47 = vpop.eup %349 }
 0x1d2   :  { %270 = vst.msk [vmem:[%s481_s5] sm:$0xff] %vm269_vm0, %v350_v47 }
 0x1d5   :  { %v352_v48 = vpop.eup %351 }
 0x1d6   :  { %271 = vst.msk [vmem:[%s481_s5 + $0x8] sm:$0xff] %vm269_vm0, %v352_v48 }
 0x1d7   :  { %276 = vsyncpa [#allocation4], 1 }
 0x1d8   :  { %277 = vsyncpa [#allocation6], 1 }

</bundles_post_ra>
